<compile_context>
chip_gen: v7x
topology: tpu7x:2x2x1
jax: 0.10.0
libtpu: 0.0.40
codegen_flags: <defaults>
</compile_context>

<pallas_src>
import math
from functools import partial

import numpy as np
import jax
import jax.numpy as jnp
from jax.experimental import pallas as pl
from jax.experimental.pallas import tpu as pltpu

LOCAL_SIZE = 5
LOCAL_WEIGHT = 0.5
_S = LOCAL_SIZE * LOCAL_SIZE


def _silu(x):
    return x * jax.nn.sigmoid(x)


# --------------------------- hardware-aware budgets ---------------------------
def _query_vmem_bytes():
    try:
        info = pltpu.get_tpu_info()
        for attr in ("vmem_capacity_bytes", "vmem_size_bytes", "vmem_bytes"):
            v = getattr(info, attr, None)
            if v:
                return int(v)
    except Exception:
        pass
    return 64 * 1024 * 1024        # conservative (v7x per-core VMEM)


_PHYS_VMEM = _query_vmem_bytes()


def _spec(shape, index_map, buffers=None):
    """BlockSpec with optional pipeline_mode=pl.Buffered(n); falls back cleanly."""
    if buffers is None:
        return pl.BlockSpec(shape, index_map)
    try:
        return pl.BlockSpec(shape, index_map, pipeline_mode=pl.Buffered(buffers))
    except Exception:
        return pl.BlockSpec(shape, index_map)


def _fast_est_bytes(c1, c, hw, out_itemsize):
    """Rough per-image VMEM footprint of the single-pass kernel."""
    act = hw * (2 * 4 * c1            # x f32 block, double buffered
                + 2 * out_itemsize * c1   # output block, double buffered
                + 4 * 2 * c           # ab f32
                + 4 * c               # b / att f32
                + 2 * 4 * c)          # bf16 temporaries (a, h, casts)
    pool = 2 * 2 * (hw * _S * 2)      # Dt + Ut bf16, double buffered
    return act + pool + (2 << 20)


# --------------------------- single-pass (fast path) ---------------------------
def _fused_kernel(x_ref, dt_ref, ut_ref, w1_ref, b1_ref,
                  wg_ref, la_ref, lbp_ref, lbn_ref, sp_ref, sn_ref,
                  wf1_ref, bf1_ref, wf2_ref, bf2_ref,
                  w2a_ref, w2b_ref, b2_ref, o_ref, *, c):
    f32, bf16 = jnp.float32, jnp.bfloat16
    x = x_ref[0].astype(bf16)                                            # (C1, HW)

    # fused cv1: one MXU pass over x, then slice a | b (c is sublane-aligned).
    ab = _silu(jnp.dot(w1_ref[...], x, preferred_element_type=f32) + b1_ref[...])
    a = ab[:c].astype(bf16)                                              # MXU operand only
    b = ab[c:]                                                           # (c, HW) f32

    # adaptive 5x5 avg pool of b  ->  (c, 25)
    pooled = jnp.dot(b.astype(bf16), dt_ref[...], preferred_element_type=f32)

    # MLCA attention weights: ECA 1-D convs as tiny band/shift matmuls (f32).
    g = jnp.mean(pooled, axis=1, keepdims=True)                          # (c, 1)
    att_g = jax.nn.sigmoid(jnp.dot(wg_ref[...], g, preferred_element_type=f32))
    conv_l = (jnp.dot(la_ref[...], pooled, preferred_element_type=f32)
              + jnp.dot(lbp_ref[...],
                        jnp.dot(pooled, sp_ref[...], preferred_element_type=f32),
                        preferred_element_type=f32)
              + jnp.dot(lbn_ref[...],
                        jnp.dot(pooled, sn_ref[...], preferred_element_type=f32),
                        preferred_element_type=f32))
    att_l = jax.nn.sigmoid(conv_l)                                       # (c, 25)
    mix = (1.0 - LOCAL_WEIGHT) * att_g + LOCAL_WEIGHT * att_l            # (c, 25)

    # upsample 5x5 -> HxW and apply:  b = b + b * att
    att = jnp.dot(mix.astype(bf16), ut_ref[...], preferred_element_type=f32)
    b = b * (1.0 + att)

    # ffn (Conv c->2c +SiLU, Conv 2c->c no act) with residual
    h = _silu(jnp.dot(wf1_ref[...], b.astype(bf16), preferred_element_type=f32)
              + bf1_ref[...]).astype(bf16)
    b = b + jnp.dot(wf2_ref[...], h, preferred_element_type=f32) + bf2_ref[...]

    # cv2 on concat([a, b]) as a split matmul
    out = _silu(jnp.dot(w2a_ref[...], a, preferred_element_type=f32)
                + jnp.dot(w2b_ref[...], b.astype(bf16), preferred_element_type=f32)
                + b2_ref[...])
    o_ref[0] = out.astype(o_ref.dtype)


def _fused_call(x, p, c, out_dtype, vmem_limit):
    B, C1, HW = x.shape
    ops = [p['Dt'], p['Ut'], p['w1_t'], p['b1'],
           p['Wg'], p['La'], p['Lbp'], p['Lbn'], p['Sp'], p['Sn'],
           p['wf1_t'], p['bf1'], p['wf2_t'], p['bf2'],
           p['w2a_t'], p['w2b_t'], p['b2']]
    in_specs = ([pl.BlockSpec((1, C1, HW), lambda b: (b, 0, 0))]
                + [_spec(o.shape, lambda b: (0, 0), buffers=1) for o in ops])
    return pl.pallas_call(
        partial(_fused_kernel, c=c),
        out_shape=jax.ShapeDtypeStruct((B, C1, HW), out_dtype),
        grid=(B,),
        in_specs=in_specs,
        out_specs=pl.BlockSpec((1, C1, HW), lambda b: (b, 0, 0)),
        compiler_params=pltpu.CompilerParams(
            dimension_semantics=("parallel",),
            vmem_limit_bytes=vmem_limit),
    )(x, *ops)


# --------------------------- two-stage (tiled) path ---------------------------
def _pool_kernel(x_ref, w1_ref, b1_ref, dt_ref, pooled_ref, *, c, hw, tile_hw):
    f32, bf16 = jnp.float32, jnp.bfloat16
    t = pl.program_id(1)

    @pl.when(t == 0)
    def _init():
        pooled_ref[...] = jnp.zeros_like(pooled_ref)

    x = x_ref[0]                                                         # (C1, thw) f32
    if hw % tile_hw:
        # partial last tile: zero OOB lanes (Dt rows past hw are zero-padded too)
        lane = jax.lax.broadcasted_iota(jnp.int32, (1, tile_hw), 1)
        x = jnp.where(t * tile_hw + lane < hw, x, 0.0)
    x = x.astype(bf16)
    w1b = w1_ref[...][c:]                                                # b-half of cv1
    b1b = b1_ref[...][c:]
    b = _silu(jnp.dot(w1b, x, preferred_element_type=f32) + b1b)
    pooled_ref[0] = pooled_ref[0] + jnp.dot(b.astype(bf16), dt_ref[...],
                                            preferred_element_type=f32)


def _apply_kernel(x_ref, mix_ref, ut_ref, w1_ref, b1_ref,
                  wf1_ref, bf1_ref, wf2_ref, bf2_ref,
                  w2a_ref, w2b_ref, b2_ref, o_ref, *, c):
    f32, bf16 = jnp.float32, jnp.bfloat16
    x = x_ref[0].astype(bf16)                                            # (C1, thw)
    ab = _silu(jnp.dot(w1_ref[...], x, preferred_element_type=f32) + b1_ref[...])
    a = ab[:c].astype(bf16)
    b = ab[c:]
    att = jnp.dot(mix_ref[0], ut_ref[...], preferred_element_type=f32)   # (c, thw)
    b = b * (1.0 + att)
    h = _silu(jnp.dot(wf1_ref[...], b.astype(bf16), preferred_element_type=f32)
              + bf1_ref[...]).astype(bf16)
    b = b + jnp.dot(wf2_ref[...], h, preferred_element_type=f32) + bf2_ref[...]
    out = _silu(jnp.dot(w2a_ref[...], a, preferred_element_type=f32)
                + jnp.dot(w2b_ref[...], b.astype(bf16), preferred_element_type=f32)
                + b2_ref[...])
    o_ref[0] = out.astype(o_ref.dtype)


def _conv1d_same(seq, w):
    """PyTorch Conv1d(1,1,k,padding=(k-1)//2,bias=False) on each row of seq (B, L)."""
    k = w.shape[0]
    pad = (k - 1) // 2
    L = seq.shape[1]
    xp = jnp.pad(seq, ((0, 0), (pad, pad)))
    return sum(w[j] * xp[:, j:j + L] for j in range(k))


def _attention_mix(pooled, wl, wg):
    """MLCA attention weights from pooled (B, c, 25); 25*c elems -> plain XLA."""
    B, c, S = pooled.shape
    seq_l = jnp.transpose(pooled, (0, 2, 1)).reshape(B, S * c)
    att_l = jax.nn.sigmoid(_conv1d_same(seq_l, wl)).reshape(B, S, c).transpose(0, 2, 1)
    g = jnp.mean(pooled, axis=2)
    att_g = jax.nn.sigmoid(_conv1d_same(g, wg))[:, :, None]
    return (1.0 - LOCAL_WEIGHT) * att_g + LOCAL_WEIGHT * att_l


def _two_stage_call(x, p, c, out_dtype, vmem_limit, tile_hw, max_tile):
    B, C1, HW = x.shape
    if tile_hw is None:
        tile_hw = HW if HW <= max_tile else max_tile        # max_tile is a mult of 128
    n_hw = pl.cdiv(HW, tile_hw)
    hw_pad = n_hw * tile_hw
    Dt, Ut = p['Dt'], p['Ut']
    if hw_pad != HW:
        Dt = jnp.pad(Dt, ((0, hw_pad - HW), (0, 0)))        # zero rows: no OOB pollution
        Ut = jnp.pad(Ut, ((0, 0), (0, hw_pad - HW)))

    # stage 1: cv1 b-half + adaptive 5x5 avg pool, reduced over HW tiles
    pooled = pl.pallas_call(
        partial(_pool_kernel, c=c, hw=HW, tile_hw=tile_hw),
        out_shape=jax.ShapeDtypeStruct((B, c, _S), jnp.float32),
        grid=(B, n_hw),
        in_specs=[
            _spec((1, C1, tile_hw), lambda b, t: (b, 0, t), buffers=3),
            _spec(p['w1_t'].shape, lambda b, t: (0, 0), buffers=1),
            _spec(p['b1'].shape, lambda b, t: (0, 0), buffers=1),
            _spec((tile_hw, _S), lambda b, t: (t, 0), buffers=3),
        ],
        out_specs=pl.BlockSpec((1, c, _S), lambda b, t: (b, 0, 0)),
        compiler_params=pltpu.CompilerParams(
            dimension_semantics=("parallel", "arbitrary"),
            vmem_limit_bytes=vmem_limit),
    )(x, p['w1_t'], p['b1'], Dt)

    # tiny MLCA/ECA attention-weight convs in XLA
    mix = _attention_mix(pooled, p['wl'], p['wg']).astype(jnp.bfloat16)

    # stage 2: recompute cv1 per tile, apply attention, ffn, cv2
    weights = [p['w1_t'], p['b1'], p['wf1_t'], p['bf1'], p['wf2_t'], p['bf2'],
               p['w2a_t'], p['w2b_t'], p['b2']]
    w_specs = [_spec(w.shape, lambda b, t: (0, 0), buffers=1) for w in weights]

    out = pl.pallas_call(
        partial(_apply_kernel, c=c),
        out_shape=jax.ShapeDtypeStruct((B, C1, HW), out_dtype),
        grid=(B, n_hw),
        in_specs=[
            pl.BlockSpec((1, C1, tile_hw), lambda b, t: (b, 0, t)),
            pl.BlockSpec((1, c, _S), lambda b, t: (b, 0, 0)),
            pl.BlockSpec((_S, tile_hw), lambda b, t: (0, t)),
        ] + w_specs,
        out_specs=pl.BlockSpec((1, C1, tile_hw), lambda b, t: (b, 0, t)),
        compiler_params=pltpu.CompilerParams(
            dimension_semantics=("parallel", "parallel"),
            vmem_limit_bytes=vmem_limit),
    )(x, mix, Ut, *weights)
    return out


# ------------------------------- parameter setup --------------------------------
def adaptive_pool_matrix(in_size, out_size):
    """Row-stochastic (out, in) matrix implementing F.adaptive_avg_pool semantics."""
    m = np.zeros((out_size, in_size), dtype=np.float32)
    for i in range(out_size):
        s = (i * in_size) // out_size
        e = -((-(i + 1) * in_size) // out_size)
        m[i, s:e] = 1.0 / (e - s)
    return m


def _conv_bn(key, cin, cout, eps=1e-5):
    """1x1 Conv2d(bias=False) folded with eval-mode BatchNorm2d."""
    kw, kg, kb, km, kv = jax.random.split(key, 5)
    w = 0.1 * jax.random.normal(kw, (cin, cout), jnp.float32)
    gamma = 1.0 + 0.1 * jax.random.normal(kg, (cout,), jnp.float32)
    beta = 0.1 * jax.random.normal(kb, (cout,), jnp.float32)
    mean = 0.1 * jax.random.normal(km, (cout,), jnp.float32)
    var = 1.0 + 0.1 * jax.random.uniform(kv, (cout,), jnp.float32)
    scale = gamma / jnp.sqrt(var + eps)
    return w * scale[None, :], (beta - mean * scale)[None, :]


def _local_conv_mats(wl, c):
    """1-D 'same' conv over the (spatial-major, channel-minor) flat sequence as
    conv(P) = La @ P + Lbp @ (P @ Sp) + Lbn @ (P @ Sn), with P = pooled (c, 25)."""
    k = wl.shape[0]
    pad = (k - 1) // 2
    La = np.zeros((c, c), np.float32)
    Lbp = np.zeros((c, c), np.float32)
    Lbn = np.zeros((c, c), np.float32)
    for d in range(-pad, pad + 1):
        w = float(wl[d + pad])
        for ch in range(c):
            q = ch + d
            if 0 <= q < c:
                La[ch, q] += w
            elif q >= c:
                Lbp[ch, q - c] += w
            else:
                Lbn[ch, q + c] += w
    Sp = np.zeros((_S, _S), np.float32)   # (P @ Sp)[:, s] = P[:, s+1]
    Sn = np.zeros((_S, _S), np.float32)   # (P @ Sn)[:, s] = P[:, s-1]
    for s in range(_S - 1):
        Sp[s + 1, s] = 1.0
        Sn[s, s + 1] = 1.0
    return La, Lbp, Lbn, Sp, Sn


def _band_matrix(wg, c):
    k = wg.shape[0]
    pad = (k - 1) // 2
    Wg = np.zeros((c, c), np.float32)
    for d in range(-pad, pad + 1):
        w = float(wg[d + pad])
        for ch in range(c):
            q = ch + d
            if 0 <= q < c:
                Wg[ch, q] += w
    return Wg


def make_pmca_params(key, c1, H, W, e=0.5):
    c = int(c1 * e)
    ls = LOCAL_SIZE
    keys = jax.random.split(key, 6)
    w1, b1 = _conv_bn(keys[0], c1, 2 * c)      # cv1
    wf1, bf1 = _conv_bn(keys[1], c, 2 * c)     # ffn[0]
    wf2, bf2 = _conv_bn(keys[2], 2 * c, c)     # ffn[1] (no act)
    w2, b2 = _conv_bn(keys[3], 2 * c, c1)      # cv2

    # MLCA / ECA kernel size from in_size=c, gamma=2, b=1
    t = int(abs(math.log(c, 2) + 1) / 2)
    k = t if t % 2 else t + 1
    assert (k - 1) // 2 < c, "band-matrix formulation assumes conv pad < c"
    wl = 0.1 * jax.random.normal(keys[4], (k,), jnp.float32)
    wg = 0.1 * jax.random.normal(keys[5], (k,), jnp.float32)

    PdH = adaptive_pool_matrix(H, ls)
    PdW = adaptive_pool_matrix(W, ls)
    PuH = adaptive_pool_matrix(ls, H)
    PuW = adaptive_pool_matrix(ls, W)
    D = np.kron(PdH, PdW)                      # (25, H*W)
    U = np.kron(PuH, PuW)                      # (H*W, 25)

    La, Lbp, Lbn, Sp, Sn = _local_conv_mats(np.asarray(wl), c)
    Wg = _band_matrix(np.asarray(wg), c)

    bf16 = jnp.bfloat16

    def t_bf16(w):
        return jnp.asarray(w).T.astype(bf16)

    def col(b):
        return jnp.asarray(b).reshape(-1, 1).astype(jnp.float32)

    params = dict(
        w1_t=t_bf16(w1), b1=col(b1),
        wf1_t=t_bf16(wf1), bf1=col(bf1),
        wf2_t=t_bf16(wf2), bf2=col(bf2),
        w2a_t=t_bf16(w2[:c, :]), w2b_t=t_bf16(w2[c:, :]), b2=col(b2),
        Dt=jnp.asarray(D.T, bf16), Ut=jnp.asarray(U.T, bf16),
        wl=wl, wg=wg,
        La=jnp.asarray(La), Lbp=jnp.asarray(Lbp), Lbn=jnp.asarray(Lbn),
        Sp=jnp.asarray(Sp), Sn=jnp.asarray(Sn), Wg=jnp.asarray(Wg),
    )
    ref = dict(w1=w1, b1=b1, wf1=wf1, bf1=bf1, wf2=wf2, bf2=bf2, w2=w2, b2=b2,
               D=jnp.asarray(D), U=jnp.asarray(U), wl=wl, wg=wg)
    return params, ref


# ------------------------------------ forward ------------------------------------
def pmca_forward(x_nchw, p, *, tile_hw=None, out_dtype=jnp.bfloat16, use_fast=None):
    """PMCA forward.  out_dtype=jnp.float32 matches the PyTorch module's output
    dtype; bf16 (default) halves writeback of the memory-bound final store."""
    B, C1, H, W = x_nchw.shape
    HW = H * W
    c = p['wf1_t'].shape[1]
    x = x_nchw.reshape(B, C1, HW)     # pure reshape; bf16 cast happens in-kernel

    phys = _PHYS_VMEM
    vmem_limit = min(96 << 20, max(32 << 20, int(phys * 0.75)))
    max_tile = 2048 if phys > (96 << 20) else 1024
    if use_fast is None:
        use_fast = _fast_est_bytes(C1, c, HW, jnp.dtype(out_dtype).itemsize) <= int(phys * 0.6)

    if use_fast:
        out = _fused_call(x, p, c, out_dtype, vmem_limit)
    else:
        out = _two_stage_call(x, p, c, out_dtype, vmem_limit, tile_hw, max_tile)
    return out.reshape(B, C1, H, W)


# ------------------------------- pure-JAX reference -------------------------------
def pmca_reference(x_nchw, r):
    B, C1, H, W = x_nchw.shape
    HW = H * W
    x = x_nchw.reshape(B, C1, HW).astype(jnp.float32)

    def conv(w, bias, xx, act=True):
        y = (jnp.einsum('io,bip->bop', jnp.asarray(w, jnp.float32), xx)
             + jnp.asarray(bias, jnp.float32).reshape(1, -1, 1))
        return _silu(y) if act else y

    c = r['w1'].shape[1] // 2
    ab = conv(r['w1'], r['b1'], x)
    a, b = ab[:, :c], ab[:, c:]
    pooled = jnp.einsum('bcp,sp->bcs', b, r['D'])
    mix = _attention_mix(pooled, r['wl'], r['wg'])
    att = jnp.einsum('bcs,ps->bcp', mix, r['U'])
    b = b * (1.0 + att)
    h = conv(r['wf1'], r['bf1'], b)
    b = b + conv(r['wf2'], r['bf2'], h, act=False)
    out = conv(r['w2'], r['b2'], jnp.concatenate([a, b], axis=1))
    return out.reshape(B, C1, H, W)


if __name__ == "__main__":
    key = jax.random.PRNGKey(0)
    kx, kp = jax.random.split(key)
    fwd = jax.jit(pmca_forward, static_argnames=("tile_hw", "out_dtype", "use_fast"))

    # 1) single-pass fast path
    B, C1, H, W = 2, 16, 16, 16               # c1 == c2 == 16, c = 8
    x = jax.random.normal(kx, (B, C1, H, W), jnp.float32)
    params, ref_p = make_pmca_params(kp, C1, H, W)
    y = jax.block_until_ready(fwd(x, params))
    assert y.shape == (B, C1, H, W)
    ref = pmca_reference(x, ref_p)
    assert bool(jnp.isfinite(y).all())
    assert bool(jnp.allclose(y.astype(jnp.float32), ref, atol=5e-2, rtol=5e-2))

    # 2) two-stage tiled path, incl. a masked partial last HW tile (400 % 128 != 0)
    B2, H2, W2 = 1, 20, 20
    x2 = jax.random.normal(jax.random.PRNGKey(1), (B2, C1, H2, W2), jnp.float32)
    params2, ref_p2 = make_pmca_params(kp, C1, H2, W2)
    y2 = jax.block_until_ready(fwd(x2, params2, tile_hw=128, use_fast=False))
    ref2 = pmca_reference(x2, ref_p2)
    assert bool(jnp.isfinite(y2).all())
    assert bool(jnp.allclose(y2.astype(jnp.float32), ref2, atol=5e-2, rtol=5e-2))

    print("KERNEL_OK")
</pallas_src>

<mosaic_0001>
module attributes {stable_mosaic.version = 11 : i64} {
  func.func @_fused_kernel(%arg0: i32, %arg1: memref<1x16x256xf32, #tpu.memory_space<vmem>>, %arg2: memref<256x25xbf16, #tpu.memory_space<vmem>>, %arg3: memref<25x256xbf16, #tpu.memory_space<vmem>>, %arg4: memref<16x16xbf16, #tpu.memory_space<vmem>>, %arg5: memref<16x1xf32, #tpu.memory_space<vmem>>, %arg6: memref<8x8xf32, #tpu.memory_space<vmem>>, %arg7: memref<8x8xf32, #tpu.memory_space<vmem>>, %arg8: memref<8x8xf32, #tpu.memory_space<vmem>>, %arg9: memref<8x8xf32, #tpu.memory_space<vmem>>, %arg10: memref<25x25xf32, #tpu.memory_space<vmem>>, %arg11: memref<25x25xf32, #tpu.memory_space<vmem>>, %arg12: memref<16x8xbf16, #tpu.memory_space<vmem>>, %arg13: memref<16x1xf32, #tpu.memory_space<vmem>>, %arg14: memref<8x16xbf16, #tpu.memory_space<vmem>>, %arg15: memref<8x1xf32, #tpu.memory_space<vmem>>, %arg16: memref<16x8xbf16, #tpu.memory_space<vmem>>, %arg17: memref<16x8xbf16, #tpu.memory_space<vmem>>, %arg18: memref<16x1xf32, #tpu.memory_space<vmem>>, %arg19: memref<1x16x256xbf16, #tpu.memory_space<vmem>>) attributes {dimension_semantics = [#tpu.dimension_semantics<parallel>], iteration_bounds = array<i64: 2>, scalar_prefetch = 0 : i64, scratch_operands = 0 : i64, tpu.core_type = #tpu.core_type<tc>, window_params = [{transform_indices = @transform_0, window_bounds = array<i64: 1, 16, 256>}, {pipeline_mode = #tpu.pipeline_mode<synchronous>, transform_indices = @transform_1, window_bounds = array<i64: 256, 25>}, {pipeline_mode = #tpu.pipeline_mode<synchronous>, transform_indices = @transform_2, window_bounds = array<i64: 25, 256>}, {pipeline_mode = #tpu.pipeline_mode<synchronous>, transform_indices = @transform_3, window_bounds = array<i64: 16, 16>}, {pipeline_mode = #tpu.pipeline_mode<synchronous>, transform_indices = @transform_4, window_bounds = array<i64: 16, 1>}, {pipeline_mode = #tpu.pipeline_mode<synchronous>, transform_indices = @transform_5, window_bounds = array<i64: 8, 8>}, {pipeline_mode = #tpu.pipeline_mode<synchronous>, transform_indices = @transform_6, window_bounds = array<i64: 8, 8>}, {pipeline_mode = #tpu.pipeline_mode<synchronous>, transform_indices = @transform_7, window_bounds = array<i64: 8, 8>}, {pipeline_mode = #tpu.pipeline_mode<synchronous>, transform_indices = @transform_8, window_bounds = array<i64: 8, 8>}, {pipeline_mode = #tpu.pipeline_mode<synchronous>, transform_indices = @transform_9, window_bounds = array<i64: 25, 25>}, {pipeline_mode = #tpu.pipeline_mode<synchronous>, transform_indices = @transform_10, window_bounds = array<i64: 25, 25>}, {pipeline_mode = #tpu.pipeline_mode<synchronous>, transform_indices = @transform_11, window_bounds = array<i64: 16, 8>}, {pipeline_mode = #tpu.pipeline_mode<synchronous>, transform_indices = @transform_12, window_bounds = array<i64: 16, 1>}, {pipeline_mode = #tpu.pipeline_mode<synchronous>, transform_indices = @transform_13, window_bounds = array<i64: 8, 16>}, {pipeline_mode = #tpu.pipeline_mode<synchronous>, transform_indices = @transform_14, window_bounds = array<i64: 8, 1>}, {pipeline_mode = #tpu.pipeline_mode<synchronous>, transform_indices = @transform_15, window_bounds = array<i64: 16, 8>}, {pipeline_mode = #tpu.pipeline_mode<synchronous>, transform_indices = @transform_16, window_bounds = array<i64: 16, 8>}, {pipeline_mode = #tpu.pipeline_mode<synchronous>, transform_indices = @transform_17, window_bounds = array<i64: 16, 1>}, {transform_indices = @transform_18, window_bounds = array<i64: 1, 16, 256>}]} {
    %c0 = arith.constant 0 : index
    %c0_0 = arith.constant 0 : index
    %c0_1 = arith.constant 0 : index
    %0 = vector.load %arg1[%c0, %c0_0, %c0_1] : memref<1x16x256xf32, #tpu.memory_space<vmem>>, vector<1x16x256xf32>
    %1 = vector.shape_cast %0 : vector<1x16x256xf32> to vector<16x256xf32>
    %2 = arith.truncf %1 : vector<16x256xf32> to vector<16x256xbf16>
    %c0_2 = arith.constant 0 : index
    %c0_3 = arith.constant 0 : index
    %3 = vector.load %arg4[%c0_2, %c0_3] : memref<16x16xbf16, #tpu.memory_space<vmem>>, vector<16x16xbf16>
    %cst = arith.constant dense<0.000000e+00> : vector<16x256xf32>
    %4 = tpu.matmul %3, %2, %cst {dimension_numbers = #tpu.dot_dimension_numbers<[1], [0], [0], [1], [0, 0, 1, 1], [], []>} : vector<16x16xbf16>, vector<16x256xbf16>, vector<16x256xf32> -> vector<16x256xf32>
    %c0_4 = arith.constant 0 : index
    %c0_5 = arith.constant 0 : index
    %5 = vector.load %arg5[%c0_4, %c0_5] : memref<16x1xf32, #tpu.memory_space<vmem>>, vector<16x1xf32>
    %6 = vector.broadcast %5 : vector<16x1xf32> to vector<16x256xf32>
    %7 = arith.addf %4, %6 : vector<16x256xf32>
    %8 = arith.negf %7 : vector<16x256xf32>
    %9 = math.exp %8 : vector<16x256xf32>
    %cst_6 = arith.constant 1.000000e+00 : f32
    %10 = vector.broadcast %cst_6 : f32 to vector<16x256xf32>
    %11 = arith.addf %10, %9 : vector<16x256xf32>
    %12 = arith.divf %10, %11 : vector<16x256xf32>
    %13 = arith.mulf %7, %12 : vector<16x256xf32>
    %14 = vector.extract_strided_slice %13 {offsets = [0, 0], sizes = [8, 256], strides = [1, 1]} : vector<16x256xf32> to vector<8x256xf32>
    %15 = arith.truncf %14 : vector<8x256xf32> to vector<8x256xbf16>
    %16 = vector.extract_strided_slice %13 {offsets = [8, 0], sizes = [8, 256], strides = [1, 1]} : vector<16x256xf32> to vector<8x256xf32>
    %17 = arith.truncf %16 : vector<8x256xf32> to vector<8x256xbf16>
    %c0_7 = arith.constant 0 : index
    %c0_8 = arith.constant 0 : index
    %18 = vector.load %arg2[%c0_7, %c0_8] : memref<256x25xbf16, #tpu.memory_space<vmem>>, vector<256x25xbf16>
    %cst_9 = arith.constant dense<0.000000e+00> : vector<8x25xf32>
    %19 = tpu.matmul %17, %18, %cst_9 {dimension_numbers = #tpu.dot_dimension_numbers<[1], [0], [0], [1], [0, 0, 1, 1], [], []>} : vector<8x256xbf16>, vector<256x25xbf16>, vector<8x25xf32> -> vector<8x25xf32>
    %cst_10 = arith.constant dense<0.000000e+00> : vector<8xf32>
    %20 = vector.multi_reduction <add>, %19, %cst_10 [1] : vector<8x25xf32> to vector<8xf32>
    %21 = vector.shape_cast %20 : vector<8xf32> to vector<8x1xf32>
    %cst_11 = arith.constant 2.500000e+01 : f32
    %22 = vector.broadcast %cst_11 : f32 to vector<8x1xf32>
    %23 = arith.divf %21, %22 : vector<8x1xf32>
    %c0_12 = arith.constant 0 : index
    %c0_13 = arith.constant 0 : index
    %24 = vector.load %arg6[%c0_12, %c0_13] : memref<8x8xf32, #tpu.memory_space<vmem>>, vector<8x8xf32>
    %cst_14 = arith.constant dense<0.000000e+00> : vector<8x1xf32>
    %25 = tpu.matmul %24, %23, %cst_14 {dimension_numbers = #tpu.dot_dimension_numbers<[1], [0], [0], [1], [0, 0, 1, 1], [], []>} : vector<8x8xf32>, vector<8x1xf32>, vector<8x1xf32> -> vector<8x1xf32>
    %26 = arith.negf %25 : vector<8x1xf32>
    %27 = math.exp %26 : vector<8x1xf32>
    %cst_15 = arith.constant 1.000000e+00 : f32
    %28 = vector.broadcast %cst_15 : f32 to vector<8x1xf32>
    %29 = arith.addf %28, %27 : vector<8x1xf32>
    %30 = arith.divf %28, %29 : vector<8x1xf32>
    %c0_16 = arith.constant 0 : index
    %c0_17 = arith.constant 0 : index
    %31 = vector.load %arg7[%c0_16, %c0_17] : memref<8x8xf32, #tpu.memory_space<vmem>>, vector<8x8xf32>
    %cst_18 = arith.constant dense<0.000000e+00> : vector<8x25xf32>
    %32 = tpu.matmul %31, %19, %cst_18 {dimension_numbers = #tpu.dot_dimension_numbers<[1], [0], [0], [1], [0, 0, 1, 1], [], []>} : vector<8x8xf32>, vector<8x25xf32>, vector<8x25xf32> -> vector<8x25xf32>
    %c0_19 = arith.constant 0 : index
    %c0_20 = arith.constant 0 : index
    %33 = vector.load %arg8[%c0_19, %c0_20] : memref<8x8xf32, #tpu.memory_space<vmem>>, vector<8x8xf32>
    %c0_21 = arith.constant 0 : index
    %c0_22 = arith.constant 0 : index
    %34 = vector.load %arg10[%c0_21, %c0_22] : memref<25x25xf32, #tpu.memory_space<vmem>>, vector<25x25xf32>
    %cst_23 = arith.constant dense<0.000000e+00> : vector<8x25xf32>
    %35 = tpu.matmul %19, %34, %cst_23 {dimension_numbers = #tpu.dot_dimension_numbers<[1], [0], [0], [1], [0, 0, 1, 1], [], []>} : vector<8x25xf32>, vector<25x25xf32>, vector<8x25xf32> -> vector<8x25xf32>
    %cst_24 = arith.constant dense<0.000000e+00> : vector<8x25xf32>
    %36 = tpu.matmul %33, %35, %cst_24 {dimension_numbers = #tpu.dot_dimension_numbers<[1], [0], [0], [1], [0, 0, 1, 1], [], []>} : vector<8x8xf32>, vector<8x25xf32>, vector<8x25xf32> -> vector<8x25xf32>
    %37 = arith.addf %32, %36 : vector<8x25xf32>
    %c0_25 = arith.constant 0 : index
    %c0_26 = arith.constant 0 : index
    %38 = vector.load %arg9[%c0_25, %c0_26] : memref<8x8xf32, #tpu.memory_space<vmem>>, vector<8x8xf32>
    %c0_27 = arith.constant 0 : index
    %c0_28 = arith.constant 0 : index
    %39 = vector.load %arg11[%c0_27, %c0_28] : memref<25x25xf32, #tpu.memory_space<vmem>>, vector<25x25xf32>
    %cst_29 = arith.constant dense<0.000000e+00> : vector<8x25xf32>
    %40 = tpu.matmul %19, %39, %cst_29 {dimension_numbers = #tpu.dot_dimension_numbers<[1], [0], [0], [1], [0, 0, 1, 1], [], []>} : vector<8x25xf32>, vector<25x25xf32>, vector<8x25xf32> -> vector<8x25xf32>
    %cst_30 = arith.constant dense<0.000000e+00> : vector<8x25xf32>
    %41 = tpu.matmul %38, %40, %cst_30 {dimension_numbers = #tpu.dot_dimension_numbers<[1], [0], [0], [1], [0, 0, 1, 1], [], []>} : vector<8x8xf32>, vector<8x25xf32>, vector<8x25xf32> -> vector<8x25xf32>
    %42 = arith.addf %37, %41 : vector<8x25xf32>
    %43 = arith.negf %42 : vector<8x25xf32>
    %44 = math.exp %43 : vector<8x25xf32>
    %cst_31 = arith.constant 1.000000e+00 : f32
    %45 = vector.broadcast %cst_31 : f32 to vector<8x25xf32>
    %46 = arith.addf %45, %44 : vector<8x25xf32>
    %47 = arith.divf %45, %46 : vector<8x25xf32>
    %cst_32 = arith.constant 5.000000e-01 : f32
    %48 = vector.broadcast %cst_32 : f32 to vector<8x1xf32>
    %49 = arith.mulf %48, %30 : vector<8x1xf32>
    %cst_33 = arith.constant 5.000000e-01 : f32
    %50 = vector.broadcast %cst_33 : f32 to vector<8x25xf32>
    %51 = arith.mulf %50, %47 : vector<8x25xf32>
    %52 = vector.broadcast %49 : vector<8x1xf32> to vector<8x25xf32>
    %53 = arith.addf %52, %51 : vector<8x25xf32>
    %54 = arith.truncf %53 : vector<8x25xf32> to vector<8x25xbf16>
    %c0_34 = arith.constant 0 : index
    %c0_35 = arith.constant 0 : index
    %55 = vector.load %arg3[%c0_34, %c0_35] : memref<25x256xbf16, #tpu.memory_space<vmem>>, vector<25x256xbf16>
    %cst_36 = arith.constant dense<0.000000e+00> : vector<8x256xf32>
    %56 = tpu.matmul %54, %55, %cst_36 {dimension_numbers = #tpu.dot_dimension_numbers<[1], [0], [0], [1], [0, 0, 1, 1], [], []>} : vector<8x25xbf16>, vector<25x256xbf16>, vector<8x256xf32> -> vector<8x256xf32>
    %cst_37 = arith.constant 1.000000e+00 : f32
    %57 = vector.broadcast %cst_37 : f32 to vector<8x256xf32>
    %58 = arith.addf %57, %56 : vector<8x256xf32>
    %59 = arith.mulf %16, %58 : vector<8x256xf32>
    %c0_38 = arith.constant 0 : index
    %c0_39 = arith.constant 0 : index
    %60 = vector.load %arg12[%c0_38, %c0_39] : memref<16x8xbf16, #tpu.memory_space<vmem>>, vector<16x8xbf16>
    %61 = arith.truncf %59 : vector<8x256xf32> to vector<8x256xbf16>
    %cst_40 = arith.constant dense<0.000000e+00> : vector<16x256xf32>
    %62 = tpu.matmul %60, %61, %cst_40 {dimension_numbers = #tpu.dot_dimension_numbers<[1], [0], [0], [1], [0, 0, 1, 1], [], []>} : vector<16x8xbf16>, vector<8x256xbf16>, vector<16x256xf32> -> vector<16x256xf32>
    %c0_41 = arith.constant 0 : index
    %c0_42 = arith.constant 0 : index
    %63 = vector.load %arg13[%c0_41, %c0_42] : memref<16x1xf32, #tpu.memory_space<vmem>>, vector<16x1xf32>
    %64 = vector.broadcast %63 : vector<16x1xf32> to vector<16x256xf32>
    %65 = arith.addf %62, %64 : vector<16x256xf32>
    %66 = arith.negf %65 : vector<16x256xf32>
    %67 = math.exp %66 : vector<16x256xf32>
    %cst_43 = arith.constant 1.000000e+00 : f32
    %68 = vector.broadcast %cst_43 : f32 to vector<16x256xf32>
    %69 = arith.addf %68, %67 : vector<16x256xf32>
    %70 = arith.divf %68, %69 : vector<16x256xf32>
    %71 = arith.mulf %65, %70 : vector<16x256xf32>
    %72 = arith.truncf %71 : vector<16x256xf32> to vector<16x256xbf16>
    %c0_44 = arith.constant 0 : index
    %c0_45 = arith.constant 0 : index
    %73 = vector.load %arg14[%c0_44, %c0_45] : memref<8x16xbf16, #tpu.memory_space<vmem>>, vector<8x16xbf16>
    %cst_46 = arith.constant dense<0.000000e+00> : vector<8x256xf32>
    %74 = tpu.matmul %73, %72, %cst_46 {dimension_numbers = #tpu.dot_dimension_numbers<[1], [0], [0], [1], [0, 0, 1, 1], [], []>} : vector<8x16xbf16>, vector<16x256xbf16>, vector<8x256xf32> -> vector<8x256xf32>
    %75 = arith.addf %59, %74 : vector<8x256xf32>
    %c0_47 = arith.constant 0 : index
    %c0_48 = arith.constant 0 : index
    %76 = vector.load %arg15[%c0_47, %c0_48] : memref<8x1xf32, #tpu.memory_space<vmem>>, vector<8x1xf32>
    %77 = vector.broadcast %76 : vector<8x1xf32> to vector<8x256xf32>
    %78 = arith.addf %75, %77 : vector<8x256xf32>
    %c0_49 = arith.constant 0 : index
    %c0_50 = arith.constant 0 : index
    %79 = vector.load %arg16[%c0_49, %c0_50] : memref<16x8xbf16, #tpu.memory_space<vmem>>, vector<16x8xbf16>
    %cst_51 = arith.constant dense<0.000000e+00> : vector<16x256xf32>
    %80 = tpu.matmul %79, %15, %cst_51 {dimension_numbers = #tpu.dot_dimension_numbers<[1], [0], [0], [1], [0, 0, 1, 1], [], []>} : vector<16x8xbf16>, vector<8x256xbf16>, vector<16x256xf32> -> vector<16x256xf32>
    %c0_52 = arith.constant 0 : index
    %c0_53 = arith.constant 0 : index
    %81 = vector.load %arg17[%c0_52, %c0_53] : memref<16x8xbf16, #tpu.memory_space<vmem>>, vector<16x8xbf16>
    %82 = arith.truncf %78 : vector<8x256xf32> to vector<8x256xbf16>
    %cst_54 = arith.constant dense<0.000000e+00> : vector<16x256xf32>
    %83 = tpu.matmul %81, %82, %cst_54 {dimension_numbers = #tpu.dot_dimension_numbers<[1], [0], [0], [1], [0, 0, 1, 1], [], []>} : vector<16x8xbf16>, vector<8x256xbf16>, vector<16x256xf32> -> vector<16x256xf32>
    %84 = arith.addf %80, %83 : vector<16x256xf32>
    %c0_55 = arith.constant 0 : index
    %c0_56 = arith.constant 0 : index
    %85 = vector.load %arg18[%c0_55, %c0_56] : memref<16x1xf32, #tpu.memory_space<vmem>>, vector<16x1xf32>
    %86 = vector.broadcast %85 : vector<16x1xf32> to vector<16x256xf32>
    %87 = arith.addf %84, %86 : vector<16x256xf32>
    %88 = arith.negf %87 : vector<16x256xf32>
    %89 = math.exp %88 : vector<16x256xf32>
    %cst_57 = arith.constant 1.000000e+00 : f32
    %90 = vector.broadcast %cst_57 : f32 to vector<16x256xf32>
    %91 = arith.addf %90, %89 : vector<16x256xf32>
    %92 = arith.divf %90, %91 : vector<16x256xf32>
    %93 = arith.mulf %87, %92 : vector<16x256xf32>
    %94 = arith.truncf %93 : vector<16x256xf32> to vector<16x256xbf16>
    %c0_58 = arith.constant 0 : index
    %c0_59 = arith.constant 0 : index
    %c0_60 = arith.constant 0 : index
    %95 = vector.load %arg19[%c0_58, %c0_59, %c0_60] : memref<1x16x256xbf16, #tpu.memory_space<vmem>>, vector<1x16x256xbf16>
    %96 = vector.shape_cast %95 : vector<1x16x256xbf16> to vector<16x256xbf16>
    %97 = vector.shape_cast %94 : vector<16x256xbf16> to vector<1x16x256xbf16>
    tpu.vector_store %arg19[%c0_58, %c0_59, %c0_60], %97 {strides = array<i32>} : memref<1x16x256xbf16, #tpu.memory_space<vmem>>, vector<1x16x256xbf16>,
    return
  }
  func.func @transform_0(%arg0: i32) -> (i32, i32, i32) {
    %c0_i32 = arith.constant 0 : i32
    %c0_i32_0 = arith.constant 0 : i32
    %c0_i32_1 = arith.constant 0 : i32
    return %arg0, %c0_i32, %c0_i32_0 : i32, i32, i32
  }
  func.func @transform_1(%arg0: i32) -> (i32, i32) {
    %c0_i32 = arith.constant 0 : i32
    %c0_i32_0 = arith.constant 0 : i32
    %c0_i32_1 = arith.constant 0 : i32
    return %c0_i32, %c0_i32_0 : i32, i32
  }
  func.func @transform_2(%arg0: i32) -> (i32, i32) {
    %c0_i32 = arith.constant 0 : i32
    %c0_i32_0 = arith.constant 0 : i32
    %c0_i32_1 = arith.constant 0 : i32
    return %c0_i32, %c0_i32_0 : i32, i32
  }
  func.func @transform_3(%arg0: i32) -> (i32, i32) {
    %c0_i32 = arith.constant 0 : i32
    %c0_i32_0 = arith.constant 0 : i32
    %c0_i32_1 = arith.constant 0 : i32
    return %c0_i32, %c0_i32_0 : i32, i32
  }
  func.func @transform_4(%arg0: i32) -> (i32, i32) {
    %c0_i32 = arith.constant 0 : i32
    %c0_i32_0 = arith.constant 0 : i32
    %c0_i32_1 = arith.constant 0 : i32
    return %c0_i32, %c0_i32_0 : i32, i32
  }
  func.func @transform_5(%arg0: i32) -> (i32, i32) {
    %c0_i32 = arith.constant 0 : i32
    %c0_i32_0 = arith.constant 0 : i32
    %c0_i32_1 = arith.constant 0 : i32
    return %c0_i32, %c0_i32_0 : i32, i32
  }
  func.func @transform_6(%arg0: i32) -> (i32, i32) {
    %c0_i32 = arith.constant 0 : i32
    %c0_i32_0 = arith.constant 0 : i32
    %c0_i32_1 = arith.constant 0 : i32
    return %c0_i32, %c0_i32_0 : i32, i32
  }
  func.func @transform_7(%arg0: i32) -> (i32, i32) {
    %c0_i32 = arith.constant 0 : i32
    %c0_i32_0 = arith.constant 0 : i32
    %c0_i32_1 = arith.constant 0 : i32
    return %c0_i32, %c0_i32_0 : i32, i32
  }
  func.func @transform_8(%arg0: i32) -> (i32, i32) {
    %c0_i32 = arith.constant 0 : i32
    %c0_i32_0 = arith.constant 0 : i32
    %c0_i32_1 = arith.constant 0 : i32
    return %c0_i32, %c0_i32_0 : i32, i32
  }
  func.func @transform_9(%arg0: i32) -> (i32, i32) {
    %c0_i32 = arith.constant 0 : i32
    %c0_i32_0 = arith.constant 0 : i32
    %c0_i32_1 = arith.constant 0 : i32
    return %c0_i32, %c0_i32_0 : i32, i32
  }
  func.func @transform_10(%arg0: i32) -> (i32, i32) {
    %c0_i32 = arith.constant 0 : i32
    %c0_i32_0 = arith.constant 0 : i32
    %c0_i32_1 = arith.constant 0 : i32
    return %c0_i32, %c0_i32_0 : i32, i32
  }
  func.func @transform_11(%arg0: i32) -> (i32, i32) {
    %c0_i32 = arith.constant 0 : i32
    %c0_i32_0 = arith.constant 0 : i32
    %c0_i32_1 = arith.constant 0 : i32
    return %c0_i32, %c0_i32_0 : i32, i32
  }
  func.func @transform_12(%arg0: i32) -> (i32, i32) {
    %c0_i32 = arith.constant 0 : i32
    %c0_i32_0 = arith.constant 0 : i32
    %c0_i32_1 = arith.constant 0 : i32
    return %c0_i32, %c0_i32_0 : i32, i32
  }
  func.func @transform_13(%arg0: i32) -> (i32, i32) {
    %c0_i32 = arith.constant 0 : i32
    %c0_i32_0 = arith.constant 0 : i32
    %c0_i32_1 = arith.constant 0 : i32
    return %c0_i32, %c0_i32_0 : i32, i32
  }
  func.func @transform_14(%arg0: i32) -> (i32, i32) {
    %c0_i32 = arith.constant 0 : i32
    %c0_i32_0 = arith.constant 0 : i32
    %c0_i32_1 = arith.constant 0 : i32
    return %c0_i32, %c0_i32_0 : i32, i32
  }
  func.func @transform_15(%arg0: i32) -> (i32, i32) {
    %c0_i32 = arith.constant 0 : i32
    %c0_i32_0 = arith.constant 0 : i32
    %c0_i32_1 = arith.constant 0 : i32
    return %c0_i32, %c0_i32_0 : i32, i32
  }
  func.func @transform_16(%arg0: i32) -> (i32, i32) {
    %c0_i32 = arith.constant 0 : i32
    %c0_i32_0 = arith.constant 0 : i32
    %c0_i32_1 = arith.constant 0 : i32
    return %c0_i32, %c0_i32_0 : i32, i32
  }
  func.func @transform_17(%arg0: i32) -> (i32, i32) {
    %c0_i32 = arith.constant 0 : i32
    %c0_i32_0 = arith.constant 0 : i32
    %c0_i32_1 = arith.constant 0 : i32
    return %c0_i32, %c0_i32_0 : i32, i32
  }
  func.func @transform_18(%arg0: i32) -> (i32, i32, i32) {
    %c0_i32 = arith.constant 0 : i32
    %c0_i32_0 = arith.constant 0 : i32
    %c0_i32_1 = arith.constant 0 : i32
    return %arg0, %c0_i32, %c0_i32_0 : i32, i32, i32
  }
}

</mosaic_0001>

<bundles_post_ra>
// kernel: pmca_forward.1
= control target key start
LH: loop header
LB: loop body
LE: loop exit
PB: predicated region body
PF: predicated region fallthrough
CT: control target
= control target key end

     0   :  { %s2184_s27 = smov 0   ;;  %s2411_s0 = inlined_call_operand.vmem [shape: f32[2,16,256], index: 0, kind: input, shape index: {}]   ;;  %s2412_s1 = inlined_call_operand.vmem [shape: bf16[256,25], index: 1, kind: input, shape index: {}]   ;;  %s2413_s2 = inlined_call_operand.vmem [shape: bf16[25,256], index: 2, kind: input, shape index: {}]   ;;  %s2414_s3 = inlined_call_operand.vmem [shape: bf16[16,16], index: 3, kind: input, shape index: {}]   ;;  %s2415_s4 = inlined_call_operand.vmem [shape: f32[16,1], index: 4, kind: input, shape index: {}]   ;;  %s2416_s5 = inlined_call_operand.vmem [shape: f32[8,8], index: 5, kind: input, shape index: {}]   ;;  %s2417_s6 = inlined_call_operand.vmem [shape: f32[8,8], index: 6, kind: input, shape index: {}]   ;;  %s2418_s7 = inlined_call_operand.vmem [shape: f32[8,8], index: 7, kind: input, shape index: {}]   ;;  %s2419_s8 = inlined_call_operand.vmem [shape: f32[8,8], index: 8, kind: input, shape index: {}]   ;;  %s2420_s9 = inlined_call_operand.vmem [shape: f32[25,25], index: 9, kind: input, shape index: {}]   ;;  %s2421_s10 = inlined_call_operand.vmem [shape: f32[25,25], index: 10, kind: input, shape index: {}]   ;;  %s2422_s11 = inlined_call_operand.vmem [shape: bf16[16,8], index: 11, kind: input, shape index: {}]   ;;  %s2423_s12 = inlined_call_operand.vmem [shape: f32[16,1], index: 12, kind: input, shape index: {}]   ;;  %s2424_s13 = inlined_call_operand.vmem [shape: bf16[8,16], index: 13, kind: input, shape index: {}]   ;;  %s2425_s14 = inlined_call_operand.vmem [shape: f32[8,1], index: 14, kind: input, shape index: {}]   ;;  %s2426_s15 = inlined_call_operand.vmem [shape: bf16[16,8], index: 15, kind: input, shape index: {}]   ;;  %s2427_s16 = inlined_call_operand.vmem [shape: bf16[16,8], index: 16, kind: input, shape index: {}]   ;;  %s2428_s17 = inlined_call_operand.vmem [shape: f32[16,1], index: 17, kind: input, shape index: {}]   ;;  %s2429_s18 = inlined_call_operand.vmem [shape: bf16[2,16,256], index: 18, kind: output, shape index: {}]  }
   0x1   :  { %2432 = sst [smem:[#allocation2_spill]] %s2411_s0 }
   0x2   :  { %2433 = sst [smem:[#allocation3_spill]] %s2412_s1 }
   0x3   :  { %2434 = sst [smem:[#allocation4_spill]] %s2413_s2 }
   0x4 LB: > { %s1801_s28 = sadd.s32 4294967295, %s2081_s27   ;;  %p1805_p0 = scmp.ge.s32.totalorder %s2081_s27, 1  ;;  %s2081_s27 = sphi %s2184_s27, %s28_s27  }
   0x5   : > { %p512_p1 = scmp.lt.s32.totalorder %s2081_s27, 3 }
   0x7   : > { %p513_p2 = pnand %p1805_p0, %p512_p1 }
   0x8   : > { %p566_p3 = scmp.lt.s32.totalorder (!%p513_p2), %s1801_s28, 1  ;;  %v2083_v0 = vmov (!%p513_p2), 0   ;;  %v586_v1 = vld [vmem:[%s2415_s4 + $0x8] sm:$0xff] (!%p513_p2)  ;;  %s2435_s20 = sld [smem:[#allocation2_spill]] (!%p513_p2)  ;;  %v1993_v7 = vld [vmem:[%s2414_s3] sm:$0xff] (!%p513_p2)   ;;  %vm602_vm0 = vcmask (!%p513_p2), 130048  }
   0x9   : > { %516 = sbr.rel (%p513_p2) target bundleno = 2286 (0x8ee), region = 92  ;;  %638 = vmatprep.mubr.bf16.mxu1 (!%p513_p2), %v2083_v0  ;;  %1991 = vset.pattern.permute.xlu0 (!%p513_p2), %v2083_v0  ;;  %s2436_s25 = sld [smem:[#allocation3_spill]] (!%p513_p2)  ;;  %vm849_vm1 = vcmask (!%p513_p2), 203776   ;;  %v2084_v50 = vmov (!%p513_p2), 0.0   ;;  %vm2085_vm2 = vmmov (!%p513_p2), 0   ;;  %v938_v51 = vld [vmem:[%s2420_s9] sm:$0xff] (!%p513_p2) }
   0xa   : > { %594 = vperm.xlu0 (!%p513_p2), %1991, %v586_v1   ;;  %1992 = vset.pattern.permute.xlu1 (!%p513_p2), %v2083_v0  ;;  %v939_v52 = vld [vmem:[%s2420_s9 + $0x8] sm:$0xff] (!%p513_p2)  ;;  %v855_v55 = vld [vmem:[%s2416_s5] sm:$0xff] (!%p513_p2)  ;;  %vm856_vm3 = vcmask (!%p513_p2), 64512   ;;  %v940_v57 = vld [vmem:[%s2420_s9 + $0x10] sm:$0xff] (!%p513_p2)  ;;  %vm945_vm4 = vcmask (!%p513_p2), 1040384   ;;  %v2086_v59 = vmov (!%p513_p2), 0.0|0.0  }
   0xb   : > { %1913 = vmatprep.subr.mxu0 (!%p513_p2), %v2084_v50  ;;  %1915 = vmatprep.mubr.msk.f32.mxu0 (!%p513_p2), %vm2085_vm2, %v2084_v50  ;;  %v1956_v56 = vpack.c.bf16 (!%p513_p2), %v939_v52, %v938_v51  ;;  %v941_v58 = vld [vmem:[%s2420_s9 + $0x18] sm:$0x1] (!%p513_p2)  ;;  %vm2087_vm5 = vmmov (!%p513_p2), 1   ;;  %s2439_s22 = sld [smem:[#allocation4_spill]] (!%p513_p2)  ;;  %vm1357_vm7 = vcmask (!%p513_p2), 1043456   ;;  %vm1358_vm8 = vcmask (!%p513_p2), 1044480  }
   0xc   : > { %v1959_v60 = vpack.c.bf16 (!%p513_p2), %v941_v58, %v940_v57  ;;  %vm2291_vm6 = vmpackc.low (!%p513_p2), %vm945_vm4, %vm2087_vm5 }
   0xf   : > { %v1994_v9 = vld [vmem:[%s2436_s25 + $0x40] sm:$0xff] (!%p513_p2)   ;;  %v1996_v11 = vld [vmem:[%s2436_s25 + $0x48] sm:$0xff] (!%p513_p2)   ;;  %v1998_v13 = vld [vmem:[%s2436_s25 + $0x50] sm:$0xff] (!%p513_p2)  }
  0x10   : > { %s2441_s28 = smov (!%p566_p3, %s1801_s28), 1  ;;  %v1995_v10 = vld [vmem:[%s2436_s25] sm:$0xff]   ;;  %v1997_v12 = vld [vmem:[%s2436_s25 + $0x8] sm:$0xff]   ;;  %v1999_v14 = vld [vmem:[%s2436_s25 + $0x10] sm:$0xff]  }
  0x11   : > { %s1869_s0 = sshll.u32 %s2441_s28, 5  ;;  %v2000_v15 = vld [vmem:[%s2436_s25 + $0x58] sm:$0xff]   ;;  %v2002_v17 = vld [vmem:[%s2436_s25 + $0x60] sm:$0xff]   ;;  %v2004_v19 = vld [vmem:[%s2436_s25 + $0x68] sm:$0xff]   ;;  %s1870_s26 = sshll.u32 %s2441_s28, 4 }
  0x12   : > { %s570_s21 = scalar_lea.vmem %s2435_s20, %s1869_s0  ;;  %v2001_v16 = vld [vmem:[%s2436_s25 + $0x18] sm:$0xff]   ;;  %v2003_v18 = vld [vmem:[%s2436_s25 + $0x20] sm:$0xff]   ;;  %v2005_v20 = vld [vmem:[%s2436_s25 + $0x28] sm:$0xff]   ;;  %s575_s0 = scalar_lea.vmem %s2429_s18, %s1870_s26 }
  0x13   : > { %v578_v2 = vld [vmem:[%s570_s21 + $0x8] sm:$0xff]  ;;  %v580_v3 = vld [vmem:[%s570_s21 + $0x18] sm:$0xff]  ;;  %v577_v4 = vld [vmem:[%s570_s21] sm:$0xff] }
  0x14   : > { %v582_v5 = vpack.c.bf16 %v580_v3, %v578_v2  ;;  %v579_v6 = vld [vmem:[%s570_s21 + $0x10] sm:$0xff]  ;;  %v2008_v23 = vld [vmem:[%s2436_s25 + $0x78] sm:$0xff]   ;;  %v937_v2 = vld [vmem:[%s2418_s7] sm:$0xff] }
  0x15   : > { %v581_v8 = vpack.c.bf16 %v579_v6, %v577_v4  ;;  %v2006_v21 = vld [vmem:[%s2436_s25 + $0x70] sm:$0xff]   ;;  %v2009_v24 = vld [vmem:[%s2436_s25 + $0x38] sm:$0xff]   ;;  %v1167_v6 = vld [vmem:[%s2421_s10 + $0x8] sm:$0xff] }
  0x16   : > { %606 = vmatprep.subr.bf16.mxu1 %v582_v5  ;;  %v2007_v22 = vld [vmem:[%s2436_s25 + $0x30] sm:$0xff]   ;;  %v1166_v5 = vld [vmem:[%s2421_s10] sm:$0xff] }
  0x17   : > { %607 = vmatpush1.bf16.msra.mxu1 %v581_v8 }
  0x18   : > { %1873 = vmatprep.subr.bf16.mxu1 %v1994_v9  ;;  %v936_v9 = vld [vmem:[%s2417_s6] sm:$0xff] }
  0x1a   : > { %1811 = vmatmul.mubr.msk.bf16.vlgmr.msra.gmra.mrb[0].mxu1 %vm602_vm0, %v1993_v7 }
  0x1b   : > { %1874 = vmatpush3.bf16.msra.mxu1 %v1995_v10  ;;  %v1963_v10 = vpack.c.bf16 %v1167_v6, %v1166_v5 }
  0x1c   : > { %1875 = vmatprep.subr.bf16.mxu1 %v1996_v11  ;;  %v1168_v11 = vld [vmem:[%s2421_s10 + $0x10] sm:$0xff] }
  0x1f   : > { %1876 = vmatpush3.bf16.msra.mxu1 %v1997_v12  ;;  %v1169_v12 = vld [vmem:[%s2421_s10 + $0x18] sm:$0x1] }
  0x20   : > { %1877 = vmatprep.subr.bf16.mxu1 %v1998_v13  ;;  %v1966_v13 = vpack.c.bf16 %v1169_v12, %v1168_v11 }
  0x23   : > { %1878 = vmatpush3.bf16.msra.mxu1 %v1999_v14 }
  0x24   : > { %1879 = vmatprep.subr.bf16.mxu1 %v2000_v15 }
  0x27   : > { %1880 = vmatpush3.bf16.msra.mxu1 %v2001_v16  ;;  %v1414_v16 = vld [vmem:[%s2423_s12] sm:$0xff] }
  0x28   : > { %1881 = vmatprep.subr.bf16.mxu1 %v2002_v17  ;;  %v1415_v17 = vld [vmem:[%s2423_s12 + $0x8] sm:$0xff] }
  0x2b   : > { %1882 = vmatpush3.bf16.msra.mxu1 %v2003_v18  ;;  %v585_v18 = vld [vmem:[%s2415_s4] sm:$0xff] }
  0x2c   : > { %1883 = vmatprep.subr.bf16.mxu1 %v2004_v19  ;;  %v1560_v19 = vld [vmem:[%s2425_s14] sm:$0xff] }
  0x2f   : > { %1884 = vmatpush3.bf16.msra.mxu1 %v2005_v20  ;;  %v1688_v20 = vld [vmem:[%s2428_s17] sm:$0xff] }
  0x30   : > { %1885 = vmatprep.subr.bf16.mxu1 %v2006_v21  ;;  %v1689_v21 = vld [vmem:[%s2428_s17 + $0x8] sm:$0xff] }
  0x33   : > { %1886 = vmatpush3.bf16.msra.mxu1 %v2007_v22  ;;  %v1165_v22 = vld [vmem:[%s2419_s8] sm:$0xff] }
  0x34   : > { %1887 = vmatprep.subr.bf16.mxu1 %v2008_v23 }
  0x37   : > { %1888 = vmatpush3.bf16.msra.mxu1 %v2009_v24 }
  0x89   : > { %v595_v26 = vpop.permute.xlu0 %594 }
  0xed   : > { %v2256_v25 = vpop.f32.mrb[0].mxu1 }
  0xee   : > { %v2258_v27 = vpop.f32.mrb[1].mxu1 }
  0xef   : > { %v644_v28 = vpop.f32.mrb[2].mxu1 }
  0xf0   : > { %v645_v29 = vadd.f32 %v644_v28, %v595_v26  ;;  %v646_v30 = vpop.f32.mrb[3].mxu1  ;;  %v2010_v28 = vld [vmem:[%s2439_s22] ss:$8 sps:$4 sm:$0xff]  }
  0xf1   : > { %v647_v31 = vadd.f32 %v646_v30, %v595_v26  ;;  %v2012_v26 = vld [vmem:[%s2439_s22 + $0x4] ss:$8 sps:$4 sm:$0xff]   ;;  %v2088_v30 = vmov 65535  }
  0xf2   : > { %v1814_v32 = vmul.f32 -1.442695, %v645_v29  ;;  %1367 = vmatprep.subr.bf16.mxu1 %v2012_v26 }
  0xf3   : > { %v1815_v33 = vmul.f32 -1.442695, %v647_v31 }
  0xf4   : > { %2019 = vpow2.f32 %v1814_v32  ;;  %v2013_v32 = vld [vmem:[%s2439_s22 + $0x10] ss:$8 sps:$4 sm:$0x1f]  }
  0xf5   : > { %2021 = vpow2.f32 %v1815_v33 }
  0xfe   : > { %v2020_v34 = vpop.eup %2019 }
  0xff   : > { %v2022_v35 = vpop.eup %2021  ;;  %v663_v36 = vadd.f32 1.0, %v2020_v34 }
 0x100   : > { %v664_v37 = vadd.f32 1.0, %v2022_v35 }
 0x101   : > { %2023 = vrcp.f32 %v663_v36 }
 0x102   : > { %2025 = vrcp.f32 %v664_v37 }
 0x10b   : > { %v2024_v38 = vpop.eup %2023 }
 0x10c   : > { %v2026_v39 = vpop.eup %2025  ;;  %v2260_v40 = vmul.f32 %v2024_v38, %v645_v29  ;;  %v2015_v29 = vld [vmem:[%s2439_s22 + $0x14] ss:$8 sps:$4 sm:$0x1f]  }
 0x10d   : > { %v2262_v41 = vmul.f32 %v2026_v39, %v647_v31  ;;  %v1359_v31 = vsel %vm1357_vm7, 4294967295, %v2088_v30 }
 0x10e   : > { %v679_v43 = vpack.c.bf16 %v2260_v40, %v2260_v40  ;;  %v1360_v33 = vsel %vm1358_vm8, %v1359_v31, 0 }
 0x10f   : > { %v680_v42 = vpack.c.bf16 %v2262_v41, %v2262_v41  ;;  %v1365_v34 = vand.u32 %v2015_v29, %v1360_v33  ;;  %v1362_v35 = vand.u32 %v2013_v32, %v1360_v33  ;;  %v1513_v29 = vld [vmem:[%s2424_s13] sm:$0xf] }
 0x111   : > { %841 = vmatprep.mubr.bf16.mxu1 %v680_v42 }
 0x112   : > { %842 = vmatmul.mubr.bf16.vlgmr.msra.gmra.mrb[4].mxu1 %v679_v43 }
 0x113   : > { %1399 = vmatprep.mubr.bf16.mxu1 %v2083_v0  ;;  %1368 = vmatpush1.bf16.msra.mxu1 %v2010_v28 }
 0x114   : > { %1369 = vmatprep.subr.bf16.mxu1 %v1365_v34 }
 0x117   : > { %1370 = vmatpush1.bf16.msra.mxu1 %v1362_v35 }
 0x1e5   : > { %v1889_v44 = vpop.f32.mrb[4].mxu1 }
 0x1e6   : > { %v1890_v45 = vpop.f32.mrb[5].mxu1 }
 0x1e7   : > { %v2269_v46 = vadd.f32 %v1890_v45, %v1889_v44  ;;  %v1892_v47 = vpop.f32.mrb[6].mxu1 }
 0x1e8   : > { %v1893_v48 = vpop.f32.mrb[7].mxu1 }
 0x1e9   : > { %v850_v49 = vsel %vm849_vm1, %v2269_v46, 0.0 }
 0x1ea   : > { %851 = vadd.xlane.f32.xlu0 %v850_v49 }
 0x277   : > { %v852_v53 = vpop.xlane.xlu0 %851 }
 0x278   : > { %v854_v54 = vmul.f32 0.04, %v852_v53 }
 0x27a   : > { %1914 = vmatpush3.msra.mxu0 %v854_v54 }
 0x27b   : > { %1916 = vmatmul.mubr.msk.f32.vlgmr.msra.gmra.mrb[0].mxu0 %vm856_vm3, %v855_v55  ;;  %1955 = vmatprep.subr.bf16.mxu0 %v2086_v59 }
 0x27c   : > { %1957 = vmatpush3.bf16.msra.mxu0 %v1956_v56  ;;  %1926 = vmatprep.mubr.msk.f32.mxu0 %vm2085_vm2, %v2084_v50 }
 0x27d   : > { %1958 = vmatprep.subr.bf16.mxu0 %v2086_v59 }
 0x280   : > { %1961 = vmatpush3.bf16.msk.msra.mxu0 %vm2291_vm6, %v1959_v60 }
 0x281   : > { %1929 = vmatprep.subr.mxu0 %v2084_v50 }
 0x283   : > { %1927 = vmatmul.mubr.msk.f32.vlgmr.msra.gmra.mrb[2].mxu0 %vm849_vm1, %v2269_v46 }
 0x284   : > { %1931 = vmatprep.mubr.msk.f32.mxu0 %vm2085_vm2, %v2084_v50 }
 0x34e   : > { %v926_v62 = vpop.f32.mrb[0].mxu0 }
 0x34f   : > { %v1833_v63 = vmul.f32 -1.442695, %v926_v62  ;;  %v1917_v1 = vpop.f32.mrb[1].mxu0 }
 0x351   : > { %2027 = vpow2.f32 %v1833_v63 }
 0x356   : > { %v1015_v3 = vpop.f32.mrb[2].mxu0 }
 0x357   : > { %v1928_v4 = vpop.f32.mrb[3].mxu0  ;;  %1930 = vmatpush3.msra.mxu0 %v1015_v3 }
 0x358   : > { %1932 = vmatmul.mubr.msk.f32.vlgmr.msra.gmra.mrb[4].mxu0 %vm856_vm3, %v937_v2  ;;  %1934 = vmatprep.subr.mxu0 %v2084_v50 }
 0x359   : > { %1935 = vmatpush3.msra.mxu0 %v2269_v46  ;;  %1936 = vmatprep.mubr.msk.f32.mxu0 %vm2085_vm2, %v2084_v50 }
 0x35a   : > { %1962 = vmatprep.subr.bf16.mxu0 %v2086_v59 }
 0x35b   : > { %v2028_v7 = vpop.eup %2027 }
 0x35c   : > { %v933_v8 = vadd.f32 1.0, %v2028_v7 }
 0x35e   : > { %2029 = vrcp.f32 %v933_v8 }
 0x360   : > { %1937 = vmatmul.mubr.msk.f32.vlgmr.msra.gmra.mrb[4].mxu0 %vm856_vm3, %v936_v9 }
 0x361   : > { %1964 = vmatpush3.bf16.msra.mxu0 %v1963_v10  ;;  %1947 = vmatprep.mubr.msk.f32.mxu0 %vm2085_vm2, %v2084_v50 }
 0x362   : > { %1965 = vmatprep.subr.bf16.mxu0 %v2086_v59  ;;  %v2016_v59 = vld [vmem:[%s2422_s11] sm:$0xff]  }
 0x365   : > { %1968 = vmatpush3.bf16.msk.msra.mxu0 %vm2291_vm6, %v1966_v13 }
 0x366   : > { %1950 = vmatprep.subr.mxu0 %v2084_v50 }
 0x368   : > { %v2030_v14 = vpop.eup %2029  ;;  %1948 = vmatmul.mubr.msk.f32.vlgmr.msra.gmra.mrb[6].mxu0 %vm849_vm1, %v2269_v46 }
 0x369   : > { %v1323_v15 = vmul.f32 0.5, %v2030_v14  ;;  %1952 = vmatprep.mubr.msk.f32.mxu0 %vm2085_vm2, %v2084_v50 }
 0x36b   : > { %1327 = vperm.xlu1 %1992, %v1323_v15  }
 0x36f   : > { %1418 = vperm.xlu1 %1992, %v1414_v16  }
 0x373   : > { %1423 = vperm.xlu1 %1992, %v1415_v17  }
 0x377   : > { %589 = vperm.xlu1 %1992, %v585_v18  }
 0x37b   : > { %1563 = vperm.xlu1 %1992, %v1560_v19  }
 0x37f   : > { %1692 = vperm.xlu1 %1992, %v1688_v20  }
 0x383   : > { %1697 = vperm.xlu1 %1992, %v1689_v21  }
 0x3ea   : > { %v1328_v45 = vpop.permute.xlu1 %1327 }
 0x43b   : > { %v1239_v23 = vpop.f32.mrb[6].mxu0 }
 0x43c   : > { %v1949_v24 = vpop.f32.mrb[7].mxu0  ;;  %1951 = vmatpush3.msra.mxu0 %v1239_v23 }
 0x43d   : > { %1953 = vmatmul.mubr.msk.f32.vlgmr.msra.gmra.mrb[4].mxu0 %vm856_vm3, %v1165_v22 }
 0x43e   : > { %1472 = vmatprep.mubr.bf16.mxu0 %v2083_v0 }
 0x510   : > { %v1312_v36 = vpop.f32.mrb[4].mxu0 }
 0x511   : > { %v1841_v37 = vmul.f32 -1.442695, %v1312_v36  ;;  %v1954_v38 = vpop.f32.mrb[5].mxu0 }
 0x513   : > { %2031 = vpow2.f32 %v1841_v37 }
 0x51d   : > { %v2032_v39 = vpop.eup %2031 }
 0x51e   : > { %v1320_v42 = vadd.f32 1.0, %v2032_v39 }
 0x520   : > { %2033 = vrcp.f32 %v1320_v42 }
 0x52a   : > { %v2034_v43 = vpop.eup %2033 }
 0x52b   : > { %v1324_v44 = vmul.f32 0.5, %v2034_v43 }
 0x52d   : > { %v1330_v46 = vadd.f32 %v1328_v45, %v1324_v44 }
 0x52f   : > { %v1331_v47 = vpack.c.bf16 %v1330_v46, %v1330_v46 }
 0x531   : > { %1846 = vmatmul.mubr.msk.bf16.vlgmr.msra.gmra.mrb[8].mxu1 %vm849_vm1, %v1331_v47 }
 0x532   : > { %1549 = vmatprep.mubr.bf16.mxu1 %v2083_v0 }
 0x604   : > { %v1401_v48 = vpop.f32.mrb[8].mxu1 }
 0x605   : > { %v1402_v49 = vadd.f32 1.0, %v1401_v48  ;;  %v1403_v50 = vpop.f32.mrb[9].mxu1 }
 0x606   : > { %v1404_v51 = vadd.f32 1.0, %v1403_v50  ;;  %v1405_v52 = vpop.f32.mrb[10].mxu1 }
 0x607   : > { %v2367_v53 = vmul.f32 %v1402_v49, %v2260_v40  ;;  %v1406_v54 = vpop.f32.mrb[11].mxu1  ;;  %v1419_v40 = vpop.permute.xlu1 %1418 }
 0x608   : > { %v2370_v55 = vmul.f32 %v1404_v51, %v2262_v41 }
 0x609   : > { %v1412_v56 = vpack.c.bf16 %v2367_v53, %v2367_v53 }
 0x60a   : > { %v1413_v57 = vpack.c.bf16 %v2370_v55, %v2370_v55 }
 0x60b   : > { %v1435_v58 = vsel %vm1357_vm7, %v1412_v56, 0  ;;  %v1424_v62 = vpop.permute.xlu1 %1423 }
 0x60c   : > { %1848 = vmatprep.subr.msk.bf16.mxu0 %vm1357_vm7, %v1413_v57 }
 0x60d   : > { %1441 = vmatpush1.bf16.msra.mxu0 %v1435_v58 }
 0x60f   : > { %v590_v30 = vpop.permute.xlu1 %589 }
 0x610   : > { %1849 = vmatmul.mubr.msk.bf16.vlgmr.msra.gmra.mrb[8].mxu0 %vm856_vm3, %v2016_v59  ;;  %v641_v31 = vadd.f32 %v2256_v25, %v590_v30  ;;  %v643_v32 = vadd.f32 %v2258_v27, %v590_v30  ;;  %v2018_v59 = vld [vmem:[%s2426_s15] sm:$0xff]  }
 0x611   : > { %1620 = vmatprep.mubr.bf16.mxu0 %v2083_v0 }
 0x612   : > { %v1812_v33 = vmul.f32 -1.442695, %v641_v31  ;;  %v1813_v34 = vmul.f32 -1.442695, %v643_v32 }
 0x613   : > { %v1564_v46 = vpop.permute.xlu1 %1563 }
 0x6e3   : > { %v1474_v41 = vpop.f32.mrb[8].mxu0 }
 0x6e4   : > { %v1475_v60 = vadd.f32 %v1474_v41, %v1419_v40  ;;  %v1476_v61 = vpop.f32.mrb[9].mxu0 }
 0x6e5   : > { %v1477_v63 = vadd.f32 %v1476_v61, %v1419_v40  ;;  %v1478_v1 = vpop.f32.mrb[10].mxu0  ;;  %v1693_v40 = vpop.permute.xlu1 %1692 }
 0x6e6   : > { %v1850_v2 = vmul.f32 -1.442695, %v1475_v60  ;;  %v1479_v3 = vadd.f32 %v1478_v1, %v1424_v62  ;;  %v1480_v4 = vpop.f32.mrb[11].mxu0 }
 0x6e7   : > { %v1851_v5 = vmul.f32 -1.442695, %v1477_v63  ;;  %v1481_v6 = vadd.f32 %v1480_v4, %v1424_v62 }
 0x6e8   : > { %2035 = vpow2.f32 %v1850_v2  ;;  %v1852_v7 = vmul.f32 -1.442695, %v1479_v3 }
 0x6e9   : > { %2037 = vpow2.f32 %v1851_v5  ;;  %v1853_v8 = vmul.f32 -1.442695, %v1481_v6  ;;  %v1698_v62 = vpop.permute.xlu1 %1697 }
 0x6ea   : > { %2039 = vpow2.f32 %v1852_v7 }
 0x6eb   : > { %2041 = vpow2.f32 %v1853_v8 }
 0x6f2   : > { %v2036_v9 = vpop.eup %2035 }
 0x6f3   : > { %v2038_v10 = vpop.eup %2037  ;;  %v1495_v11 = vadd.f32 1.0, %v2036_v9 }
 0x6f4   : > { %v2040_v12 = vpop.eup %2039  ;;  %v1496_v13 = vadd.f32 1.0, %v2038_v10 }
 0x6f5   : > { %v2042_v14 = vpop.eup %2041  ;;  %2043 = vrcp.f32 %v1495_v11  ;;  %v1497_v15 = vadd.f32 1.0, %v2040_v12 }
 0x6f6   : > { %2045 = vrcp.f32 %v1496_v13  ;;  %v1498_v16 = vadd.f32 1.0, %v2042_v14 }
 0x6f7   : > { %2047 = vrcp.f32 %v1497_v15 }
 0x6f8   : > { %2049 = vrcp.f32 %v1498_v16 }
 0x6f9   : > { %2051 = vpow2.f32 %v1812_v33 }
 0x6fa   : > { %2053 = vpow2.f32 %v1813_v34 }
 0x6ff   : > { %v2044_v17 = vpop.eup %2043 }
 0x700   : > { %v2046_v18 = vpop.eup %2045  ;;  %v1507_v21 = vmul.f32 %v2044_v17, %v1475_v60 }
 0x701   : > { %v2048_v19 = vpop.eup %2047  ;;  %v1508_v23 = vmul.f32 %v2046_v18, %v1477_v63 }
 0x702   : > { %v2050_v20 = vpop.eup %2049  ;;  %v1509_v22 = vmul.f32 %v2048_v19, %v1479_v3 }
 0x703   : > { %v1510_v24 = vmul.f32 %v2050_v20, %v1481_v6  ;;  %v2052_v35 = vpop.eup %2051 }
 0x704   : > { %v1511_v26 = vpack.c.bf16 %v1509_v22, %v1507_v21  ;;  %v2054_v36 = vpop.eup %2053  ;;  %v661_v37 = vadd.f32 1.0, %v2052_v35 }
 0x705   : > { %v1512_v28 = vpack.c.bf16 %v1510_v24, %v1508_v23  ;;  %v662_v38 = vadd.f32 1.0, %v2054_v36 }
 0x706   : > { %2055 = vrcp.f32 %v661_v37 }
 0x707   : > { %1517 = vmatprep.subr.bf16.mxu1 %v1512_v28  ;;  %2057 = vrcp.f32 %v662_v38 }
 0x708   : > { %1518 = vmatpush1.bf16.msra.mxu1 %v1511_v26 }
 0x70b   : > { %1854 = vmatmul.mubr.msk.bf16.vlgmr.msra.gmra.mrb[12].mxu1 %vm602_vm0, %v1513_v29 }
 0x710   : > { %v2056_v39 = vpop.eup %2055 }
 0x711   : > { %v2058_v43 = vpop.eup %2057  ;;  %v673_v49 = vmul.f32 %v2056_v39, %v641_v31 }
 0x712   : > { %v674_v50 = vmul.f32 %v2058_v43, %v643_v32 }
 0x713   : > { %v677_v57 = vpack.c.bf16 %v673_v49, %v673_v49 }
 0x714   : > { %v678_v58 = vpack.c.bf16 %v674_v50, %v674_v50 }
 0x7de   : > { %v1551_v42 = vpop.f32.mrb[12].mxu1 }
 0x7df   : > { %v1558_v44 = vadd.f32 %v1551_v42, %v2367_v53  ;;  %v1553_v45 = vpop.f32.mrb[13].mxu1  ;;  %v2017_v53 = vld [vmem:[%s2427_s16] sm:$0xff]  }
 0x7e0   : > { %v1559_v25 = vadd.f32 %v1553_v45, %v2370_v55  ;;  %v1555_v27 = vpop.f32.mrb[14].mxu1  ;;  %v1640_v55 = vsel %vm1357_vm7, %v677_v57, 0 }
 0x7e1   : > { %v1566_v47 = vadd.f32 %v1564_v46, %v1558_v44  ;;  %v1556_v48 = vpop.f32.mrb[15].mxu1 }
 0x7e2   : > { %v1567_v51 = vadd.f32 %v1564_v46, %v1559_v25 }
 0x7e3   : > { %v1572_v52 = vpack.c.bf16 %v1566_v47, %v1566_v47 }
 0x7e4   : > { %v1573_v54 = vpack.c.bf16 %v1567_v51, %v1567_v51 }
 0x7e5   : > { %v1583_v56 = vsel %vm1357_vm7, %v1572_v52, 0 }
 0x7e6   : > { %1856 = vmatprep.subr.msk.bf16.mxu0 %vm1357_vm7, %v1573_v54 }
 0x7e7   : > { %1589 = vmatpush1.bf16.msra.mxu0 %v1583_v56 }
 0x7e8   : > { %1859 = vmatprep.subr.msk.bf16.mxu0 %vm1357_vm7, %v678_v58 }
 0x7ea   : > { %1857 = vmatmul.mubr.msk.bf16.vlgmr.msra.gmra.mrb[12].mxu0 %vm856_vm3, %v2017_v53 }
 0x7eb   : > { %1646 = vmatpush1.bf16.msra.mxu0 %v1640_v55  ;;  %1677 = vmatprep.mubr.bf16.mxu0 %v2083_v0 }
 0x7f6   : > { %1860 = vmatmul.mubr.msk.bf16.vlgmr.msra.gmra.mrb[12].mxu0 %vm856_vm3, %v2018_v59 }
 0x8c9   : > { %v1679_v41 = vpop.f32.mrb[12].mxu0 }
 0x8ca   : > { %v1700_v60 = vadd.f32 %v1693_v40, %v1679_v41  ;;  %v1681_v61 = vpop.f32.mrb[13].mxu0 }
 0x8cb   : > { %v1701_v63 = vadd.f32 %v1693_v40, %v1681_v61  ;;  %v1683_v1 = vpop.f32.mrb[14].mxu0 }
 0x8cc   : > { %v1861_v2 = vmul.f32 -1.442695, %v1700_v60  ;;  %v1702_v3 = vadd.f32 %v1698_v62, %v1683_v1  ;;  %v1685_v4 = vpop.f32.mrb[15].mxu0 }
 0x8cd   : > { %v1862_v5 = vmul.f32 -1.442695, %v1701_v63  ;;  %v1703_v6 = vadd.f32 %v1698_v62, %v1685_v4 }
 0x8ce   : > { %2059 = vpow2.f32 %v1861_v2  ;;  %v1863_v0 = vmul.f32 -1.442695, %v1702_v3 }
 0x8cf   : > { %2061 = vpow2.f32 %v1862_v5  ;;  %v1864_v7 = vmul.f32 -1.442695, %v1703_v6 }
 0x8d0   : > { %2063 = vpow2.f32 %v1863_v0 }
 0x8d1   : > { %2065 = vpow2.f32 %v1864_v7 }
 0x8d8   : > { %v2060_v8 = vpop.eup %2059 }
 0x8d9   : > { %v2062_v9 = vpop.eup %2061  ;;  %v1716_v10 = vadd.f32 1.0, %v2060_v8 }
 0x8da   : > { %v2064_v11 = vpop.eup %2063  ;;  %v1717_v12 = vadd.f32 1.0, %v2062_v9 }
 0x8db   : > { %v2066_v13 = vpop.eup %2065  ;;  %2067 = vrcp.f32 %v1716_v10  ;;  %v1718_v14 = vadd.f32 1.0, %v2064_v11 }
 0x8dc   : > { %2069 = vrcp.f32 %v1717_v12  ;;  %v1719_v15 = vadd.f32 1.0, %v2066_v13 }
 0x8dd   : > { %2071 = vrcp.f32 %v1718_v14 }
 0x8de   : > { %2073 = vrcp.f32 %v1719_v15 }
 0x8e5   : > { %v2068_v16 = vpop.eup %2067 }
 0x8e6   : > { %v2070_v17 = vpop.eup %2069  ;;  %v1728_v18 = vmul.f32 %v2068_v16, %v1700_v60 }
 0x8e7   : > { %v2072_v19 = vpop.eup %2071  ;;  %v1729_v20 = vmul.f32 %v2070_v17, %v1701_v63 }
 0x8e8   : > { %v2074_v21 = vpop.eup %2073  ;;  %v1730_v22 = vmul.f32 %v2072_v19, %v1702_v3 }
 0x8e9   : > { %v1871_v23 = vpack.c.bf16 %v1729_v20, %v1728_v18  ;;  %v1731_v24 = vmul.f32 %v2074_v21, %v1703_v6 }
 0x8eb   : > { %1744 = vst [vmem:[%s575_s0] sm:$0xff] %v1871_v23  ;;  %v1872_v26 = vpack.c.bf16 %v1731_v24, %v1730_v22 }
 0x8ed   : > { %1745 = vst [vmem:[%s575_s0 + $0x8] sm:$0xff] %v1872_v26 }
 0x8ee PF: > { %s28_s27 = sadd.s32 1, %s2081_s27  }
 0x8ef   : > { %p25_p4 = scmp.ge.s32.totalorder %s28_s27, 4  }
 0x8f1   :  { %27 = sbr.rel (!%p25_p4) target bundleno = 4 (0x4), region = 122 }

</bundles_post_ra>
